<compile_context>
chip_gen: v7x
topology: tpu7x:2x2x1
jax: 0.10.0
libtpu: 0.0.40
codegen_flags: <defaults>
</compile_context>

<pallas_src>
import functools

import jax
import jax.numpy as jnp
from jax.experimental import pallas as pl
from jax.experimental.pallas import tpu as pltpu

LANE = 128
N_LAYERS = 8
_RELU_LAYERS = (0, 1, 2, 4, 5, 6)   # z_layer (3) and x_bar_layer (7) are linear


def _round_up(n, m):
    return ((n + m - 1) // m) * m


def _vmem_budget_bytes():
    """Generation-aware VMEM budget: 7/8 of physical per-TensorCore VMEM.

    v5e/v6e: 128 MiB -> 112 MiB budget; v7x: 64 MiB -> 56 MiB budget.
    Falls back to the v7x-safe value if the query is unavailable.
    """
    cap = 64 * 1024 * 1024
    try:
        cap = int(pltpu.get_tpu_info().vmem_capacity_bytes)
    except Exception:
        pass
    return (cap * 7) // 8


def _ae_kernel(widths, x_ref,
               w0, w1, w2, w3, w4, w5, w6, w7,
               b_pack_ref,
               x_bar_ref, z_ref):
    """x_ref: (tb, n_input_p). w_l: (fi_p, fo_p). b_pack_ref: (8, max_w) f32."""
    ws = (w0, w1, w2, w3, w4, w5, w6, w7)
    v = x_ref[...]
    for l in range(N_LAYERS):
        w = ws[l]
        fo_p = widths[l]
        y = jnp.dot(v.astype(w.dtype), w[...],
                    preferred_element_type=jnp.float32)
        y = y + b_pack_ref[l:l + 1, :fo_p]           # f32 bias row, lane-aligned
        if l in _RELU_LAYERS:
            y = jnp.maximum(y, 0.0)
        if l == 3:
            z_ref[...] = y.astype(z_ref.dtype)
        v = y
    x_bar_ref[...] = v.astype(x_bar_ref.dtype)


def make_ae_forward(params, *, compute_dtype=jnp.bfloat16, batch_tile=256):
    """One-time prepare step: pads/casts params, returns (forward_fn, operands).

    params: list of 8 (W[in, out], b[1, out]) f32 pairs in AE layer order.
    Returns forward(x, weights, bias_pack) -> (x_bar, z) with f32 outputs,
    identical semantics to the PyTorch AE.
    """
    assert len(params) == N_LAYERS
    itemsize = jnp.dtype(compute_dtype).itemsize

    # ---- pad / cast weights ONCE (outside the per-call jit) ----
    widths = []
    weights = []
    flops_per_row = 0
    weight_bytes = 0
    for w, b in params:
        fi, fo = w.shape
        fi_p, fo_p = _round_up(fi, LANE), _round_up(fo, LANE)
        wq = jnp.zeros((fi_p, fo_p), compute_dtype).at[:fi, :fo].set(
            w.astype(compute_dtype))
        weights.append(wq)
        widths.append(fo_p)
        flops_per_row += 2 * fi_p * fo_p
        weight_bytes += fi_p * fo_p * itemsize

    max_w = max(widths + [wq.shape[0] for wq in weights])

    # all 8 biases packed into a single lane-padded f32 slab
    bias_pack = jnp.zeros((N_LAYERS, max_w), jnp.float32)
    for l, (_, b) in enumerate(params):
        fo = b.shape[-1]
        bias_pack = bias_pack.at[l, :fo].set(
            b.astype(jnp.float32).reshape(fo))
    bias_bytes = bias_pack.size * 4

    n_input = params[0][0].shape[0]
    n_z = params[3][0].shape[1]
    n_input_p = weights[0].shape[0]
    n_z_p = widths[3]
    n_out_p = widths[7]
    widths = tuple(widths)

    sublane = 8 if itemsize == 4 else 16
    vmem_budget = _vmem_budget_bytes()
    kernel = functools.partial(_ae_kernel, widths)

    def forward(x, weights, bias_pack):
        B = x.shape[0]
        assert x.shape[1] == n_input

        # ---- batch tile sizing ----
        # Tight VMEM model: single-buffered residents + double-buffered I/O
        # tiles + ~2 live f32 activation slabs.
        per_row = (2 * n_input_p * itemsize
                   + 2 * (n_out_p + n_z_p) * 4
                   + 2 * max_w * 4)
        fixed = weight_bytes + bias_bytes
        tb_max = max(sublane,
                     ((vmem_budget - fixed) // per_row) // sublane * sublane)

        desired = _round_up(B, sublane)
        tb = max(sublane,
                 min(batch_tile, tb_max, desired) // sublane * sublane)
        if desired > tb:
            # rebalance so the last tile isn't mostly padding
            steps = -(-desired // tb)
            tb = _round_up(-(-desired // steps), sublane)
        elif desired >= 2 * sublane:
            # >=2 grid steps so v7x can shard across its 2 TensorCores
            # (one extra ~0.35us grid step on v5e/v6e: negligible)
            tb = _round_up(-(-desired // 2), sublane)
        b_total = _round_up(desired, tb)

        x_p = jnp.zeros((b_total, n_input_p), compute_dtype).at[
            :B, :n_input].set(x.astype(compute_dtype))

        def act_spec(width):
            return pl.BlockSpec((tb, width), lambda i: (i, 0))

        def resident_spec(shape):
            # constant index -> fetched once; Buffered(1) -> single VMEM copy
            return pl.BlockSpec(shape, lambda i: (0, 0),
                                pipeline_mode=pl.Buffered(1))

        in_specs = [act_spec(n_input_p)]
        in_specs += [resident_spec(wq.shape) for wq in weights]
        in_specs += [resident_spec(bias_pack.shape)]

        io_bytes = (x_p.size * itemsize + weight_bytes + bias_bytes
                    + b_total * (n_out_p + n_z_p) * 4)
        cost = pl.CostEstimate(flops=b_total * flops_per_row,
                               transcendentals=0,
                               bytes_accessed=io_bytes)

        x_bar_p, z_p = pl.pallas_call(
            kernel,
            out_shape=(
                jax.ShapeDtypeStruct((b_total, n_out_p), jnp.float32),  # x_bar
                jax.ShapeDtypeStruct((b_total, n_z_p), jnp.float32),    # z
            ),
            grid=(b_total // tb,),
            in_specs=in_specs,
            out_specs=(act_spec(n_out_p), act_spec(n_z_p)),
            compiler_params=pltpu.CompilerParams(
                dimension_semantics=("parallel",),   # v7x: shard batch over TCs
                vmem_limit_bytes=int(vmem_budget),
            ),
            cost_estimate=cost,
        )(x_p, *weights, bias_pack)

        return x_bar_p[:B, :n_input], z_p[:B, :n_z]

    return forward, (tuple(weights), bias_pack)


def init_params(key, dims):
    """PyTorch-Linear-style deterministic init. dims = [(in, out), ...]."""
    params = []
    for (fan_in, fan_out) in dims:
        key, kw, kb = jax.random.split(key, 3)
        bound = 1.0 / jnp.sqrt(jnp.float32(fan_in))
        w = jax.random.uniform(kw, (fan_in, fan_out), jnp.float32, -bound, bound)
        b = jax.random.uniform(kb, (1, fan_out), jnp.float32, -bound, bound)
        params.append((w, b))
    return params


def reference_forward(x, params):
    """Pure-JAX reference with identical semantics (for sanity check)."""
    def lin(v, w, b):
        return v @ w + b

    h1 = jnp.maximum(lin(x, *params[0]), 0.0)
    h2 = jnp.maximum(lin(h1, *params[1]), 0.0)
    h3 = jnp.maximum(lin(h2, *params[2]), 0.0)
    z = lin(h3, *params[3])
    d1 = jnp.maximum(lin(z, *params[4]), 0.0)
    d2 = jnp.maximum(lin(d1, *params[5]), 0.0)
    d3 = jnp.maximum(lin(d2, *params[6]), 0.0)
    x_bar = lin(d3, *params[7])
    return x_bar, z


if __name__ == "__main__":
    # Small, consistent AE config: n_input=64, enc 32/32/64, z=16, dec 32/32/64.
    n_enc_1, n_enc_2, n_enc_3 = 32, 32, 64
    n_dec_1, n_dec_2, n_dec_3 = 32, 32, 64
    n_input, n_z = 64, 16
    B = 8

    dims = [
        (n_input, n_enc_1),
        (n_enc_1, n_enc_2),
        (n_enc_2, n_enc_3),
        (n_enc_3, n_z),
        (n_z, n_dec_1),
        (n_dec_1, n_dec_2),
        (n_dec_2, n_dec_3),
        (n_dec_3, n_input),
    ]

    key = jax.random.PRNGKey(0)
    key, kx = jax.random.split(key)
    x = jax.random.normal(kx, (B, n_input), jnp.float32)
    params = init_params(key, dims)

    x_bar_ref, z_ref = reference_forward(x, params)

    # ---- f32 path: bit-comparable to the PyTorch / pure-JAX reference ----
    fwd_f32, ops_f32 = make_ae_forward(params, compute_dtype=jnp.float32)
    fwd_f32 = jax.jit(fwd_f32)
    x_bar, z = fwd_f32(x, *ops_f32)
    jax.block_until_ready((x_bar, z))

    assert x_bar.shape == (B, n_input) and z.shape == (B, n_z)
    assert jnp.allclose(x_bar, x_bar_ref, atol=1e-5, rtol=1e-5)
    assert jnp.allclose(z, z_ref, atol=1e-5, rtol=1e-5)

    # ---- default bf16-weight path (MXU fast path, f32 accumulation) ----
    fwd_bf16, ops_bf16 = make_ae_forward(params)   # compute_dtype=bf16 default
    fwd_bf16 = jax.jit(fwd_bf16)
    x_bar_b, z_b = fwd_bf16(x, *ops_bf16)
    jax.block_until_ready((x_bar_b, z_b))
    assert jnp.allclose(x_bar_b, x_bar_ref, atol=1e-1, rtol=1e-1)
    assert jnp.allclose(z_b, z_ref, atol=1e-1, rtol=1e-1)

    print("KERNEL_OK")
</pallas_src>

<mosaic_0001>
module attributes {stable_mosaic.version = 11 : i64} {
  func.func @_ae_kernel(%arg0: i32, %arg1: memref<8x128xf32, #tpu.memory_space<vmem>>, %arg2: memref<128x128xf32, #tpu.memory_space<vmem>>, %arg3: memref<128x128xf32, #tpu.memory_space<vmem>>, %arg4: memref<128x128xf32, #tpu.memory_space<vmem>>, %arg5: memref<128x128xf32, #tpu.memory_space<vmem>>, %arg6: memref<128x128xf32, #tpu.memory_space<vmem>>, %arg7: memref<128x128xf32, #tpu.memory_space<vmem>>, %arg8: memref<128x128xf32, #tpu.memory_space<vmem>>, %arg9: memref<128x128xf32, #tpu.memory_space<vmem>>, %arg10: memref<8x128xf32, #tpu.memory_space<vmem>>, %arg11: memref<8x128xf32, #tpu.memory_space<vmem>>, %arg12: memref<8x128xf32, #tpu.memory_space<vmem>>) attributes {dimension_semantics = [#tpu.dimension_semantics<parallel>], iteration_bounds = array<i64: 1>, scalar_prefetch = 0 : i64, scratch_operands = 0 : i64, tpu.core_type = #tpu.core_type<tc>, window_params = [{transform_indices = @transform_0, window_bounds = array<i64: 8, 128>}, {pipeline_mode = #tpu.pipeline_mode<synchronous>, transform_indices = @transform_1, window_bounds = array<i64: 128, 128>}, {pipeline_mode = #tpu.pipeline_mode<synchronous>, transform_indices = @transform_2, window_bounds = array<i64: 128, 128>}, {pipeline_mode = #tpu.pipeline_mode<synchronous>, transform_indices = @transform_3, window_bounds = array<i64: 128, 128>}, {pipeline_mode = #tpu.pipeline_mode<synchronous>, transform_indices = @transform_4, window_bounds = array<i64: 128, 128>}, {pipeline_mode = #tpu.pipeline_mode<synchronous>, transform_indices = @transform_5, window_bounds = array<i64: 128, 128>}, {pipeline_mode = #tpu.pipeline_mode<synchronous>, transform_indices = @transform_6, window_bounds = array<i64: 128, 128>}, {pipeline_mode = #tpu.pipeline_mode<synchronous>, transform_indices = @transform_7, window_bounds = array<i64: 128, 128>}, {pipeline_mode = #tpu.pipeline_mode<synchronous>, transform_indices = @transform_8, window_bounds = array<i64: 128, 128>}, {pipeline_mode = #tpu.pipeline_mode<synchronous>, transform_indices = @transform_9, window_bounds = array<i64: 8, 128>}, {transform_indices = @transform_10, window_bounds = array<i64: 8, 128>}, {transform_indices = @transform_11, window_bounds = array<i64: 8, 128>}]} {
    %c0 = arith.constant 0 : index
    %c0_0 = arith.constant 0 : index
    %0 = vector.load %arg1[%c0, %c0_0] : memref<8x128xf32, #tpu.memory_space<vmem>>, vector<8x128xf32>
    %c0_1 = arith.constant 0 : index
    %c0_2 = arith.constant 0 : index
    %1 = vector.load %arg2[%c0_1, %c0_2] : memref<128x128xf32, #tpu.memory_space<vmem>>, vector<128x128xf32>
    %cst = arith.constant dense<0.000000e+00> : vector<8x128xf32>
    %2 = tpu.matmul %0, %1, %cst {dimension_numbers = #tpu.dot_dimension_numbers<[1], [0], [0], [1], [0, 0, 1, 1], [], []>} : vector<8x128xf32>, vector<128x128xf32>, vector<8x128xf32> -> vector<8x128xf32>
    %c0_3 = arith.constant 0 : index
    %c0_4 = arith.constant 0 : index
    %3 = vector.load %arg10[%c0_3, %c0_4] : memref<8x128xf32, #tpu.memory_space<vmem>>, vector<1x128xf32>
    %4 = vector.broadcast %3 : vector<1x128xf32> to vector<8x128xf32>
    %5 = arith.addf %2, %4 : vector<8x128xf32>
    %cst_5 = arith.constant 0.000000e+00 : f32
    %6 = vector.broadcast %cst_5 : f32 to vector<8x128xf32>
    %7 = arith.maximumf %5, %6 : vector<8x128xf32>
    %c0_6 = arith.constant 0 : index
    %c0_7 = arith.constant 0 : index
    %8 = vector.load %arg3[%c0_6, %c0_7] : memref<128x128xf32, #tpu.memory_space<vmem>>, vector<128x128xf32>
    %cst_8 = arith.constant dense<0.000000e+00> : vector<8x128xf32>
    %9 = tpu.matmul %7, %8, %cst_8 {dimension_numbers = #tpu.dot_dimension_numbers<[1], [0], [0], [1], [0, 0, 1, 1], [], []>} : vector<8x128xf32>, vector<128x128xf32>, vector<8x128xf32> -> vector<8x128xf32>
    %c1 = arith.constant 1 : index
    %c0_9 = arith.constant 0 : index
    %10 = vector.load %arg10[%c1, %c0_9] : memref<8x128xf32, #tpu.memory_space<vmem>>, vector<1x128xf32>
    %11 = vector.broadcast %10 : vector<1x128xf32> to vector<8x128xf32>
    %12 = arith.addf %9, %11 : vector<8x128xf32>
    %cst_10 = arith.constant 0.000000e+00 : f32
    %13 = vector.broadcast %cst_10 : f32 to vector<8x128xf32>
    %14 = arith.maximumf %12, %13 : vector<8x128xf32>
    %c0_11 = arith.constant 0 : index
    %c0_12 = arith.constant 0 : index
    %15 = vector.load %arg4[%c0_11, %c0_12] : memref<128x128xf32, #tpu.memory_space<vmem>>, vector<128x128xf32>
    %cst_13 = arith.constant dense<0.000000e+00> : vector<8x128xf32>
    %16 = tpu.matmul %14, %15, %cst_13 {dimension_numbers = #tpu.dot_dimension_numbers<[1], [0], [0], [1], [0, 0, 1, 1], [], []>} : vector<8x128xf32>, vector<128x128xf32>, vector<8x128xf32> -> vector<8x128xf32>
    %c2 = arith.constant 2 : index
    %c0_14 = arith.constant 0 : index
    %17 = vector.load %arg10[%c2, %c0_14] : memref<8x128xf32, #tpu.memory_space<vmem>>, vector<1x128xf32>
    %18 = vector.broadcast %17 : vector<1x128xf32> to vector<8x128xf32>
    %19 = arith.addf %16, %18 : vector<8x128xf32>
    %cst_15 = arith.constant 0.000000e+00 : f32
    %20 = vector.broadcast %cst_15 : f32 to vector<8x128xf32>
    %21 = arith.maximumf %19, %20 : vector<8x128xf32>
    %c0_16 = arith.constant 0 : index
    %c0_17 = arith.constant 0 : index
    %22 = vector.load %arg5[%c0_16, %c0_17] : memref<128x128xf32, #tpu.memory_space<vmem>>, vector<128x128xf32>
    %cst_18 = arith.constant dense<0.000000e+00> : vector<8x128xf32>
    %23 = tpu.matmul %21, %22, %cst_18 {dimension_numbers = #tpu.dot_dimension_numbers<[1], [0], [0], [1], [0, 0, 1, 1], [], []>} : vector<8x128xf32>, vector<128x128xf32>, vector<8x128xf32> -> vector<8x128xf32>
    %c3 = arith.constant 3 : index
    %c0_19 = arith.constant 0 : index
    %24 = vector.load %arg10[%c3, %c0_19] : memref<8x128xf32, #tpu.memory_space<vmem>>, vector<1x128xf32>
    %25 = vector.broadcast %24 : vector<1x128xf32> to vector<8x128xf32>
    %26 = arith.addf %23, %25 : vector<8x128xf32>
    %c0_20 = arith.constant 0 : index
    %c0_21 = arith.constant 0 : index
    %27 = vector.load %arg12[%c0_20, %c0_21] : memref<8x128xf32, #tpu.memory_space<vmem>>, vector<8x128xf32>
    tpu.vector_store %arg12[%c0_20, %c0_21], %26 {strides = array<i32>} : memref<8x128xf32, #tpu.memory_space<vmem>>, vector<8x128xf32>,
    %c0_22 = arith.constant 0 : index
    %c0_23 = arith.constant 0 : index
    %28 = vector.load %arg6[%c0_22, %c0_23] : memref<128x128xf32, #tpu.memory_space<vmem>>, vector<128x128xf32>
    %cst_24 = arith.constant dense<0.000000e+00> : vector<8x128xf32>
    %29 = tpu.matmul %26, %28, %cst_24 {dimension_numbers = #tpu.dot_dimension_numbers<[1], [0], [0], [1], [0, 0, 1, 1], [], []>} : vector<8x128xf32>, vector<128x128xf32>, vector<8x128xf32> -> vector<8x128xf32>
    %c4 = arith.constant 4 : index
    %c0_25 = arith.constant 0 : index
    %30 = vector.load %arg10[%c4, %c0_25] : memref<8x128xf32, #tpu.memory_space<vmem>>, vector<1x128xf32>
    %31 = vector.broadcast %30 : vector<1x128xf32> to vector<8x128xf32>
    %32 = arith.addf %29, %31 : vector<8x128xf32>
    %cst_26 = arith.constant 0.000000e+00 : f32
    %33 = vector.broadcast %cst_26 : f32 to vector<8x128xf32>
    %34 = arith.maximumf %32, %33 : vector<8x128xf32>
    %c0_27 = arith.constant 0 : index
    %c0_28 = arith.constant 0 : index
    %35 = vector.load %arg7[%c0_27, %c0_28] : memref<128x128xf32, #tpu.memory_space<vmem>>, vector<128x128xf32>
    %cst_29 = arith.constant dense<0.000000e+00> : vector<8x128xf32>
    %36 = tpu.matmul %34, %35, %cst_29 {dimension_numbers = #tpu.dot_dimension_numbers<[1], [0], [0], [1], [0, 0, 1, 1], [], []>} : vector<8x128xf32>, vector<128x128xf32>, vector<8x128xf32> -> vector<8x128xf32>
    %c5 = arith.constant 5 : index
    %c0_30 = arith.constant 0 : index
    %37 = vector.load %arg10[%c5, %c0_30] : memref<8x128xf32, #tpu.memory_space<vmem>>, vector<1x128xf32>
    %38 = vector.broadcast %37 : vector<1x128xf32> to vector<8x128xf32>
    %39 = arith.addf %36, %38 : vector<8x128xf32>
    %cst_31 = arith.constant 0.000000e+00 : f32
    %40 = vector.broadcast %cst_31 : f32 to vector<8x128xf32>
    %41 = arith.maximumf %39, %40 : vector<8x128xf32>
    %c0_32 = arith.constant 0 : index
    %c0_33 = arith.constant 0 : index
    %42 = vector.load %arg8[%c0_32, %c0_33] : memref<128x128xf32, #tpu.memory_space<vmem>>, vector<128x128xf32>
    %cst_34 = arith.constant dense<0.000000e+00> : vector<8x128xf32>
    %43 = tpu.matmul %41, %42, %cst_34 {dimension_numbers = #tpu.dot_dimension_numbers<[1], [0], [0], [1], [0, 0, 1, 1], [], []>} : vector<8x128xf32>, vector<128x128xf32>, vector<8x128xf32> -> vector<8x128xf32>
    %c6 = arith.constant 6 : index
    %c0_35 = arith.constant 0 : index
    %44 = vector.load %arg10[%c6, %c0_35] : memref<8x128xf32, #tpu.memory_space<vmem>>, vector<1x128xf32>
    %45 = vector.broadcast %44 : vector<1x128xf32> to vector<8x128xf32>
    %46 = arith.addf %43, %45 : vector<8x128xf32>
    %cst_36 = arith.constant 0.000000e+00 : f32
    %47 = vector.broadcast %cst_36 : f32 to vector<8x128xf32>
    %48 = arith.maximumf %46, %47 : vector<8x128xf32>
    %c0_37 = arith.constant 0 : index
    %c0_38 = arith.constant 0 : index
    %49 = vector.load %arg9[%c0_37, %c0_38] : memref<128x128xf32, #tpu.memory_space<vmem>>, vector<128x128xf32>
    %cst_39 = arith.constant dense<0.000000e+00> : vector<8x128xf32>
    %50 = tpu.matmul %48, %49, %cst_39 {dimension_numbers = #tpu.dot_dimension_numbers<[1], [0], [0], [1], [0, 0, 1, 1], [], []>} : vector<8x128xf32>, vector<128x128xf32>, vector<8x128xf32> -> vector<8x128xf32>
    %c7 = arith.constant 7 : index
    %c0_40 = arith.constant 0 : index
    %51 = vector.load %arg10[%c7, %c0_40] : memref<8x128xf32, #tpu.memory_space<vmem>>, vector<1x128xf32>
    %52 = vector.broadcast %51 : vector<1x128xf32> to vector<8x128xf32>
    %53 = arith.addf %50, %52 : vector<8x128xf32>
    %c0_41 = arith.constant 0 : index
    %c0_42 = arith.constant 0 : index
    %54 = vector.load %arg11[%c0_41, %c0_42] : memref<8x128xf32, #tpu.memory_space<vmem>>, vector<8x128xf32>
    tpu.vector_store %arg11[%c0_41, %c0_42], %53 {strides = array<i32>} : memref<8x128xf32, #tpu.memory_space<vmem>>, vector<8x128xf32>,
    return
  }
  func.func @transform_0(%arg0: i32) -> (i32, i32) {
    %c0_i32 = arith.constant 0 : i32
    %c0_i32_0 = arith.constant 0 : i32
    return %arg0, %c0_i32 : i32, i32
  }
  func.func @transform_1(%arg0: i32) -> (i32, i32) {
    %c0_i32 = arith.constant 0 : i32
    %c0_i32_0 = arith.constant 0 : i32
    %c0_i32_1 = arith.constant 0 : i32
    return %c0_i32, %c0_i32_0 : i32, i32
  }
  func.func @transform_2(%arg0: i32) -> (i32, i32) {
    %c0_i32 = arith.constant 0 : i32
    %c0_i32_0 = arith.constant 0 : i32
    %c0_i32_1 = arith.constant 0 : i32
    return %c0_i32, %c0_i32_0 : i32, i32
  }
  func.func @transform_3(%arg0: i32) -> (i32, i32) {
    %c0_i32 = arith.constant 0 : i32
    %c0_i32_0 = arith.constant 0 : i32
    %c0_i32_1 = arith.constant 0 : i32
    return %c0_i32, %c0_i32_0 : i32, i32
  }
  func.func @transform_4(%arg0: i32) -> (i32, i32) {
    %c0_i32 = arith.constant 0 : i32
    %c0_i32_0 = arith.constant 0 : i32
    %c0_i32_1 = arith.constant 0 : i32
    return %c0_i32, %c0_i32_0 : i32, i32
  }
  func.func @transform_5(%arg0: i32) -> (i32, i32) {
    %c0_i32 = arith.constant 0 : i32
    %c0_i32_0 = arith.constant 0 : i32
    %c0_i32_1 = arith.constant 0 : i32
    return %c0_i32, %c0_i32_0 : i32, i32
  }
  func.func @transform_6(%arg0: i32) -> (i32, i32) {
    %c0_i32 = arith.constant 0 : i32
    %c0_i32_0 = arith.constant 0 : i32
    %c0_i32_1 = arith.constant 0 : i32
    return %c0_i32, %c0_i32_0 : i32, i32
  }
  func.func @transform_7(%arg0: i32) -> (i32, i32) {
    %c0_i32 = arith.constant 0 : i32
    %c0_i32_0 = arith.constant 0 : i32
    %c0_i32_1 = arith.constant 0 : i32
    return %c0_i32, %c0_i32_0 : i32, i32
  }
  func.func @transform_8(%arg0: i32) -> (i32, i32) {
    %c0_i32 = arith.constant 0 : i32
    %c0_i32_0 = arith.constant 0 : i32
    %c0_i32_1 = arith.constant 0 : i32
    return %c0_i32, %c0_i32_0 : i32, i32
  }
  func.func @transform_9(%arg0: i32) -> (i32, i32) {
    %c0_i32 = arith.constant 0 : i32
    %c0_i32_0 = arith.constant 0 : i32
    %c0_i32_1 = arith.constant 0 : i32
    return %c0_i32, %c0_i32_0 : i32, i32
  }
  func.func @transform_10(%arg0: i32) -> (i32, i32) {
    %c0_i32 = arith.constant 0 : i32
    %c0_i32_0 = arith.constant 0 : i32
    return %arg0, %c0_i32 : i32, i32
  }
  func.func @transform_11(%arg0: i32) -> (i32, i32) {
    %c0_i32 = arith.constant 0 : i32
    %c0_i32_0 = arith.constant 0 : i32
    return %arg0, %c0_i32 : i32, i32
  }
}

</mosaic_0001>

<bundles_post_ra>
// kernel: forward.1
= control target key start
LH: loop header
LB: loop body
LE: loop exit
PB: predicated region body
PF: predicated region fallthrough
CT: control target
= control target key end

     0   :  { %17 = vsyncpa [#allocation3], 0  ;;  %s2137_s0 = inlined_call_operand.vmem [shape: f32[8,128], index: 0, kind: input, shape index: {}]   ;;  %s2138_s1 = inlined_call_operand.hbm [shape: f32[128,128], index: 1, kind: input, shape index: {}]   ;;  %s2139_s2 = inlined_call_operand.hbm [shape: f32[128,128], index: 2, kind: input, shape index: {}]   ;;  %s2140_s3 = inlined_call_operand.hbm [shape: f32[128,128], index: 3, kind: input, shape index: {}]   ;;  %s2141_s4 = inlined_call_operand.hbm [shape: f32[128,128], index: 4, kind: input, shape index: {}]   ;;  %s2142_s5 = inlined_call_operand.hbm [shape: f32[128,128], index: 5, kind: input, shape index: {}]   ;;  %s2143_s6 = inlined_call_operand.hbm [shape: f32[128,128], index: 6, kind: input, shape index: {}]   ;;  %s2144_s7 = inlined_call_operand.hbm [shape: f32[128,128], index: 7, kind: input, shape index: {}]   ;;  %s2145_s8 = inlined_call_operand.hbm [shape: f32[128,128], index: 8, kind: input, shape index: {}]   ;;  %s2146_s9 = inlined_call_operand.vmem [shape: f32[8,128], index: 9, kind: input, shape index: {}]   ;;  %s2147_s10 = inlined_call_operand.hbm [shape: f32[8,128], index: 10, kind: output, shape index: {0}]   ;;  %s2148_s11 = inlined_call_operand.hbm [shape: f32[8,128], index: 11, kind: output, shape index: {1}]  }
   0x1   :  { %18 = vsyncpa [#allocation6], 0 }
   0x2   :  { %19 = vsyncpa [#allocation9], 0 }
   0x3   :  { %20 = vsyncpa [#allocation12], 0 }
   0x4   :  { %21 = vsyncpa [#allocation15], 0 }
   0x5   :  { %22 = vsyncpa [#allocation4], 0 }
   0x6   :  { %23 = vsyncpa [#allocation18], 0  ;;  %s1783_s17 = smov [#allocation5]   ;;  %s1784_s19 = smov [#allocation8]  }
   0x7   :  { %s43_s18 = sshll.u32 %s1783_s17, 4  ;;  %s67_s20 = sshll.u32 %s1784_s19, 4  ;;  %s44_s18 = int_to_ptr.vmem [resolvable:$true] %s43_s18  ;;  %s1858_s20 = int_to_ptr.vmem [resolvable:$true] %s67_s20 }
   0x8   :  { %s1549_s23 = scalar_lea.hbm %s2139_s2, 2048 }
   0x9   :  { %p1550_p0 = scmp.ne.s32.totalorder %s2139_s2, %s1549_s23  ;;  %p1553_p1 = scmp.lt.u32.totalorder %s1549_s23, %s2139_s2 }
   0xb   :  { %p1555_p2 = pnand %p1553_p1, %p1550_p0 }
   0xd   :  { %1558 = shalt.err (!%p1555_p2)
}
   0xe   :  { %s1559_s28 = scalar_lea.vmem %s44_s18, 2048  ;;  %p1564_p4 = scmp.lt.s32.totalorder %s44_s18, %s44_s18 }
   0xf   :  { %p1560_p3 = scmp.ne.s32.totalorder %s44_s18, %s1559_s28  ;;  %p1565_p5 = scmp.lt.s32.totalorder %s1559_s28, %s1559_s28 }
  0x11   :  { %p1566_p6 = por %p1565_p5, %p1564_p4 }
  0x13   :  { %p1567_p7 = pnand %p1566_p6, %p1560_p3 }
  0x15   :  { %1570 = shalt.err (!%p1567_p7)
}
  0x16   :  { %s1785_s29 = smov 128   ;;  %s1786_s30 = smov 8  }
  0x17   :  { %49 = dma.hbm_to_vmem [thread:$0]  %s2139_s2, 2048, %s44_s18, [#allocation6], %s1785_s29, %s1785_s29, %s1786_s30  }
  0x18   :  { %s1571_s16 = scalar_lea.hbm %s2141_s4, 2048 }
  0x19   :  { %p1572_p8 = scmp.ne.s32.totalorder %s2141_s4, %s1571_s16  ;;  %p1575_p9 = scmp.lt.u32.totalorder %s1571_s16, %s2141_s4 }
  0x1b   :  { %p1577_p10 = pnand %p1575_p9, %p1572_p8 }
  0x1d   :  { %1580 = shalt.err (!%p1577_p10)
}
  0x1e   :  { %s1581_s23 = scalar_lea.vmem %s1858_s20, 2048  ;;  %p1586_p12 = scmp.lt.s32.totalorder %s1858_s20, %s1858_s20 }
  0x1f   :  { %p1582_p11 = scmp.ne.s32.totalorder %s1858_s20, %s1581_s23  ;;  %p1587_p13 = scmp.lt.s32.totalorder %s1581_s23, %s1581_s23 }
  0x21   :  { %p1588_p0 = por %p1587_p13, %p1586_p12 }
  0x23   :  { %p1589_p1 = pnand %p1588_p0, %p1582_p11 }
  0x25   :  { %1592 = shalt.err (!%p1589_p1)
}
  0x26   :  { %73 = dma.hbm_to_vmem [thread:$0]  %s2141_s4, 2048, %s1858_s20, [#allocation9], %s1785_s29, %s1785_s29, %s1786_s30  }
  0x27   :  { %s1787_s24 = smov [#allocation11]   ;;  %s1788_s26 = smov [#allocation2]  }
  0x28   :  { %s91_s25 = sshll.u32 %s1787_s24, 4  ;;  %s31_s27 = sshll.u32 %s1788_s26, 4  ;;  %s92_s25 = int_to_ptr.vmem [resolvable:$true] %s91_s25  ;;  %s1895_s27 = int_to_ptr.vmem [resolvable:$true] %s31_s27 }
  0x29   :  { %s1593_s13 = scalar_lea.hbm %s2143_s6, 2048 }
  0x2a   :  { %p1594_p2 = scmp.ne.s32.totalorder %s2143_s6, %s1593_s13  ;;  %p1597_p3 = scmp.lt.u32.totalorder %s1593_s13, %s2143_s6 }
  0x2c   :  { %p1599_p4 = pnand %p1597_p3, %p1594_p2 }
  0x2e   :  { %1602 = shalt.err (!%p1599_p4)
}
  0x2f   :  { %s1603_s4 = scalar_lea.vmem %s92_s25, 2048  ;;  %p1608_p6 = scmp.lt.s32.totalorder %s92_s25, %s92_s25 }
  0x30   :  { %p1604_p5 = scmp.ne.s32.totalorder %s92_s25, %s1603_s4  ;;  %p1609_p7 = scmp.lt.s32.totalorder %s1603_s4, %s1603_s4 }
  0x32   :  { %p1610_p8 = por %p1609_p7, %p1608_p6 }
  0x34   :  { %p1611_p9 = pnand %p1610_p8, %p1604_p5 }
  0x36   :  { %1614 = shalt.err (!%p1611_p9)
}
  0x37   :  { %97 = dma.hbm_to_vmem [thread:$0]  %s2143_s6, 2048, %s92_s25, [#allocation12], %s1785_s29, %s1785_s29, %s1786_s30  }
  0x38   :  { %s1615_s23 = scalar_lea.hbm %s2138_s1, 2048 }
  0x39   :  { %p1616_p10 = scmp.ne.s32.totalorder %s2138_s1, %s1615_s23  ;;  %p1619_p11 = scmp.lt.u32.totalorder %s1615_s23, %s2138_s1 }
  0x3b   :  { %p1621_p12 = pnand %p1619_p11, %p1616_p10 }
  0x3d   :  { %1624 = shalt.err (!%p1621_p12)
}
  0x3e   :  { %s1625_s28 = scalar_lea.vmem %s1895_s27, 2048  ;;  %p1630_p0 = scmp.lt.s32.totalorder %s1895_s27, %s1895_s27 }
  0x3f   :  { %p1626_p13 = scmp.ne.s32.totalorder %s1895_s27, %s1625_s28  ;;  %p1631_p1 = scmp.lt.s32.totalorder %s1625_s28, %s1625_s28 }
  0x41   :  { %p1632_p2 = por %p1631_p1, %p1630_p0 }
  0x43   :  { %p1633_p3 = pnand %p1632_p2, %p1626_p13 }
  0x45   :  { %1636 = shalt.err (!%p1633_p3)
}
  0x46   :  { %37 = dma.hbm_to_vmem [thread:$0]  %s2138_s1, 2048, %s1895_s27, [#allocation3], %s1785_s29, %s1785_s29, %s1786_s30  }
  0x47   :  { %s1789_s12 = smov [#allocation7]   ;;  %s1790_s14 = smov [#allocation10]  }
  0x48   :  { %s55_s13 = sshll.u32 %s1789_s12, 4  ;;  %s79_s15 = sshll.u32 %s1790_s14, 4  ;;  %s56_s13 = int_to_ptr.vmem [resolvable:$true] %s55_s13  ;;  %s1932_s15 = int_to_ptr.vmem [resolvable:$true] %s79_s15 }
  0x49   :  { %s1637_s4 = scalar_lea.hbm %s2140_s3, 2048 }
  0x4a   :  { %p1638_p4 = scmp.ne.s32.totalorder %s2140_s3, %s1637_s4  ;;  %p1641_p5 = scmp.lt.u32.totalorder %s1637_s4, %s2140_s3 }
  0x4c   :  { %p1643_p6 = pnand %p1641_p5, %p1638_p4 }
  0x4e   :  { %1646 = shalt.err (!%p1643_p6)
}
  0x4f   :  { %s1647_s1 = scalar_lea.vmem %s56_s13, 2048  ;;  %p1652_p8 = scmp.lt.s32.totalorder %s56_s13, %s56_s13 }
  0x50   :  { %p1648_p7 = scmp.ne.s32.totalorder %s56_s13, %s1647_s1  ;;  %p1653_p9 = scmp.lt.s32.totalorder %s1647_s1, %s1647_s1 }
  0x52   :  { %p1654_p10 = por %p1653_p9, %p1652_p8 }
  0x54   :  { %p1655_p11 = pnand %p1654_p10, %p1648_p7 }
  0x56   :  { %1658 = shalt.err (!%p1655_p11)
}
  0x57   :  { %61 = dma.hbm_to_vmem [thread:$0]  %s2140_s3, 2048, %s56_s13, [#allocation6], %s1785_s29, %s1785_s29, %s1786_s30  }
  0x58   :  { %s1659_s24 = scalar_lea.hbm %s2142_s5, 2048 }
  0x59   :  { %p1660_p12 = scmp.ne.s32.totalorder %s2142_s5, %s1659_s24  ;;  %p1663_p13 = scmp.lt.u32.totalorder %s1659_s24, %s2142_s5 }
  0x5b   :  { %p1665_p0 = pnand %p1663_p13, %p1660_p12 }
  0x5d   :  { %1668 = shalt.err (!%p1665_p0)
}
  0x5e   :  { %s1669_s12 = scalar_lea.vmem %s1932_s15, 2048  ;;  %p1674_p2 = scmp.lt.s32.totalorder %s1932_s15, %s1932_s15 }
  0x5f   :  { %p1670_p1 = scmp.ne.s32.totalorder %s1932_s15, %s1669_s12  ;;  %p1675_p3 = scmp.lt.s32.totalorder %s1669_s12, %s1669_s12 }
  0x61   :  { %p1676_p4 = por %p1675_p3, %p1674_p2 }
  0x63   :  { %p1677_p5 = pnand %p1676_p4, %p1670_p1 }
  0x65   :  { %1680 = shalt.err (!%p1677_p5)
}
  0x66   :  { %85 = dma.hbm_to_vmem [thread:$0]  %s2142_s5, 2048, %s1932_s15, [#allocation9], %s1785_s29, %s1785_s29, %s1786_s30  }
  0x67   :  { %s1791_s14 = smov [#allocation13]   ;;  %s1792_s17 = smov [#allocation14]  }
  0x68   :  { %s103_s16 = sshll.u32 %s1791_s14, 4  ;;  %s115_s4 = sshll.u32 %s1792_s17, 4  ;;  %s104_s16 = int_to_ptr.vmem [resolvable:$true] %s103_s16  ;;  %s1969_s4 = int_to_ptr.vmem [resolvable:$true] %s115_s4 }
  0x69   :  { %s1681_s21 = scalar_lea.hbm %s2144_s7, 2048 }
  0x6a   :  { %p1682_p6 = scmp.ne.s32.totalorder %s2144_s7, %s1681_s21  ;;  %p1685_p7 = scmp.lt.u32.totalorder %s1681_s21, %s2144_s7 }
  0x6c   :  { %p1687_p8 = pnand %p1685_p7, %p1682_p6 }
  0x6e   :  { %1690 = shalt.err (!%p1687_p8)
}
  0x6f   :  { %s1691_s5 = scalar_lea.vmem %s104_s16, 2048  ;;  %p1696_p10 = scmp.lt.s32.totalorder %s104_s16, %s104_s16 }
  0x70   :  { %p1692_p9 = scmp.ne.s32.totalorder %s104_s16, %s1691_s5  ;;  %p1697_p11 = scmp.lt.s32.totalorder %s1691_s5, %s1691_s5 }
  0x72   :  { %p1698_p12 = por %p1697_p11, %p1696_p10 }
  0x74   :  { %p1699_p13 = pnand %p1698_p12, %p1692_p9 }
  0x76   :  { %1702 = shalt.err (!%p1699_p13)
}
  0x77   :  { %109 = dma.hbm_to_vmem [thread:$0]  %s2144_s7, 2048, %s104_s16, [#allocation12], %s1785_s29, %s1785_s29, %s1786_s30  }
  0x78   :  { %s1703_s26 = scalar_lea.hbm %s2145_s8, 2048 }
  0x79   :  { %p1704_p0 = scmp.ne.s32.totalorder %s2145_s8, %s1703_s26  ;;  %p1707_p1 = scmp.lt.u32.totalorder %s1703_s26, %s2145_s8 }
  0x7b   :  { %p1709_p2 = pnand %p1707_p1, %p1704_p0 }
  0x7d   :  { %1712 = shalt.err (!%p1709_p2)
}
  0x7e   :  { %s1713_s3 = scalar_lea.vmem %s1969_s4, 2048  ;;  %p1718_p4 = scmp.lt.s32.totalorder %s1969_s4, %s1969_s4 }
  0x7f   :  { %p1714_p3 = scmp.ne.s32.totalorder %s1969_s4, %s1713_s3  ;;  %p1719_p5 = scmp.lt.s32.totalorder %s1713_s3, %s1713_s3 }
  0x81   :  { %p1720_p6 = por %p1719_p5, %p1718_p4 }
  0x83   :  { %p1721_p7 = pnand %p1720_p6, %p1714_p3 }
  0x85   :  { %1724 = shalt.err (!%p1721_p7)
}
  0x86   :  { %121 = dma.hbm_to_vmem [thread:$0]  %s2145_s8, 2048, %s1969_s4, [#allocation15], %s1785_s29, %s1785_s29, %s1786_s30  }
  0x87   :  { %1769 = dma.done.wait [#allocation3], 2048  }
  0x88   :  { %1770 = vsyncadd [#allocation3], 4294965248 }
  0x89   :  { %1771 = dma.done.wait [#allocation6], 4096  }
  0x8a   :  { %1772 = vsyncadd [#allocation6], 4294963200 }
  0x8b   :  { %1773 = dma.done.wait [#allocation9], 4096  }
  0x8c   :  { %1774 = vsyncadd [#allocation9], 4294963200 }
  0x8d   :  { %1775 = dma.done.wait [#allocation12], 4096  }
  0x8e   :  { %1776 = vsyncadd [#allocation12], 4294963200 }
  0x8f   :  { %1777 = dma.done.wait [#allocation15], 2048  }
  0x90   :  { %1778 = vsyncadd [#allocation15], 4294965248  ;;  %v1793_v0 = vmov 0.0|0.0   ;;  %vm1794_vm0 = vmmov 0   ;;  %v1795_v1 = vmov 0.0   ;;  %v149_v2 = vld [vmem:[#allocation2] sm:$0xff] }
  0x91   :  { %1342 = vmatprep.subr.bf16.mxu0 %v1793_v0  ;;  %1094 = vmatprep.mubr.msk.f32.mxu0 %vm1794_vm0, %v1795_v1  ;;  %v150_v3 = vld [vmem:[#allocation2 + $0x8] sm:$0xff]  ;;  %v151_v4 = vld [vmem:[#allocation2 + $0x10] sm:$0xff]  ;;  %v152_v6 = vld [vmem:[#allocation2 + $0x18] sm:$0xff]  ;;  %s1796_s15 = smov [#allocation17]  }
  0x92   :  { %1366 = vmatprep.subr.bf16.mxu1 %v1793_v0  ;;  %1129 = vmatprep.mubr.msk.f32.mxu1 %vm1794_vm0, %v1795_v1  ;;  %v1343_v5 = vpack.c.bf16 %v150_v3, %v149_v2  ;;  %v1346_v7 = vpack.c.bf16 %v152_v6, %v151_v4  ;;  %v153_v8 = vld [vmem:[#allocation2 + $0x20] sm:$0xff]  ;;  %v154_v9 = vld [vmem:[#allocation2 + $0x28] sm:$0xff]  ;;  %v243_v12 = vld [vmem:[#allocation5 + $0x10] sm:$0xff]  ;;  %s901_s2 = sshll.u32 %s1796_s15, 4  ;;  %s902_s2 = int_to_ptr.vmem [resolvable:$true] %s901_s2 }
  0x93   :  { %v241_v10 = vld [vmem:[#allocation5] sm:$0xff]  ;;  %v242_v11 = vld [vmem:[#allocation5 + $0x8] sm:$0xff]  ;;  %v244_v13 = vld [vmem:[#allocation5 + $0x18] sm:$0xff]  ;;  %v1349_v14 = vpack.c.bf16 %v154_v9, %v153_v8  ;;  %s1725_s18 = scalar_lea.vmem %s902_s2, 128  ;;  %p1730_p9 = scmp.lt.s32.totalorder %s902_s2, %s902_s2 }
  0x94   :  { %1344 = vmatpush3.bf16.msra.mxu0 %v1343_v5  ;;  %v1367_v15 = vpack.c.bf16 %v242_v11, %v241_v10  ;;  %v155_v16 = vld [vmem:[#allocation2 + $0x30] sm:$0xff]  ;;  %v156_v17 = vld [vmem:[#allocation2 + $0x38] sm:$0xff]  ;;  %v1370_v18 = vpack.c.bf16 %v244_v13, %v243_v12  ;;  %v245_v19 = vld [vmem:[#allocation5 + $0x20] sm:$0xff]  ;;  %p1726_p8 = scmp.ne.s32.totalorder %s902_s2, %s1725_s18  ;;  %p1731_p10 = scmp.lt.s32.totalorder %s1725_s18, %s1725_s18 }
  0x95   :  { %1345 = vmatprep.subr.bf16.mxu0 %v1793_v0  ;;  %v246_v20 = vld [vmem:[#allocation5 + $0x28] sm:$0xff]  ;;  %v1352_v21 = vpack.c.bf16 %v156_v17, %v155_v16  ;;  %v157_v22 = vld [vmem:[#allocation2 + $0x40] sm:$0xff]  ;;  %v247_v25 = vld [vmem:[#allocation5 + $0x30] sm:$0xff] }
  0x96   :  { %1368 = vmatpush3.bf16.msra.mxu1 %v1367_v15  ;;  %v158_v23 = vld [vmem:[#allocation2 + $0x48] sm:$0xff]  ;;  %v1373_v24 = vpack.c.bf16 %v246_v20, %v245_v19  ;;  %v248_v26 = vld [vmem:[#allocation5 + $0x38] sm:$0xff]  ;;  %v159_v28 = vld [vmem:[#allocation2 + $0x50] sm:$0xff]  ;;  %p1732_p11 = por %p1731_p10, %p1730_p9 }
  0x97   :  { %1369 = vmatprep.subr.bf16.mxu1 %v1793_v0  ;;  %v1355_v27 = vpack.c.bf16 %v158_v23, %v157_v22  ;;  %v160_v29 = vld [vmem:[#allocation2 + $0x58] sm:$0xff]  ;;  %v1376_v30 = vpack.c.bf16 %v248_v26, %v247_v25  ;;  %v249_v31 = vld [vmem:[#allocation5 + $0x40] sm:$0xff]  ;;  %v250_v32 = vld [vmem:[#allocation5 + $0x48] sm:$0xff] }
  0x98   :  { %1347 = vmatpush3.bf16.msra.mxu0 %v1346_v7  ;;  %v1358_v33 = vpack.c.bf16 %v160_v29, %v159_v28  ;;  %v161_v34 = vld [vmem:[#allocation2 + $0x60] sm:$0xff]  ;;  %v162_v35 = vld [vmem:[#allocation2 + $0x68] sm:$0xff]  ;;  %v1379_v36 = vpack.c.bf16 %v250_v32, %v249_v31  ;;  %v251_v37 = vld [vmem:[#allocation5 + $0x50] sm:$0xff]  ;;  %p1733_p12 = pnand %p1732_p11, %p1726_p8 }
  0x99   :  { %1348 = vmatprep.subr.bf16.mxu0 %v1793_v0  ;;  %v252_v38 = vld [vmem:[#allocation5 + $0x58] sm:$0xff]  ;;  %v1361_v39 = vpack.c.bf16 %v162_v35, %v161_v34  ;;  %v163_v40 = vld [vmem:[#allocation2 + $0x70] sm:$0xff]  ;;  %v253_v43 = vld [vmem:[#allocation5 + $0x60] sm:$0xff] }
  0x9a   :  { %1371 = vmatpush3.bf16.msra.mxu1 %v1370_v18  ;;  %v164_v41 = vld [vmem:[#allocation2 + $0x78] sm:$0xff]  ;;  %v1382_v42 = vpack.c.bf16 %v252_v38, %v251_v37  ;;  %v254_v44 = vld [vmem:[#allocation5 + $0x68] sm:$0xff]  ;;  %v148_v47 = vld [vmem:[%s2137_s0] sm:$0xff] }
  0x9b   :  { %1372 = vmatprep.subr.bf16.mxu1 %v1793_v0  ;;  %v1364_v45 = vpack.c.bf16 %v164_v41, %v163_v40  ;;  %v1385_v46 = vpack.c.bf16 %v254_v44, %v253_v43  ;;  %v255_v48 = vld [vmem:[#allocation5 + $0x70] sm:$0xff]  ;;  %v256_v49 = vld [vmem:[#allocation5 + $0x78] sm:$0xff]  ;;  %v333_v51 = vld [vmem:[#allocation7] sm:$0xff] }
  0x9c   :  { %1350 = vmatpush3.bf16.msra.mxu0 %v1349_v14  ;;  %v1388_v50 = vpack.c.bf16 %v256_v49, %v255_v48  ;;  %v334_v52 = vld [vmem:[#allocation7 + $0x8] sm:$0xff]  ;;  %v335_v53 = vld [vmem:[#allocation7 + $0x10] sm:$0xff]  ;;  %v336_v55 = vld [vmem:[#allocation7 + $0x18] sm:$0xff] }
  0x9d   :  { %1351 = vmatprep.subr.bf16.mxu0 %v1793_v0  ;;  %v1391_v54 = vpack.c.bf16 %v334_v52, %v333_v51  ;;  %v1394_v56 = vpack.c.bf16 %v336_v55, %v335_v53  ;;  %v337_v57 = vld [vmem:[#allocation7 + $0x20] sm:$0xff]  ;;  %v338_v58 = vld [vmem:[#allocation7 + $0x28] sm:$0xff]  ;;  %v339_v60 = vld [vmem:[#allocation7 + $0x30] sm:$0xff] }
  0x9e   :  { %1374 = vmatpush3.bf16.msra.mxu1 %v1373_v24  ;;  %v1397_v59 = vpack.c.bf16 %v338_v58, %v337_v57  ;;  %v340_v61 = vld [vmem:[#allocation7 + $0x38] sm:$0xff]  ;;  %v341_v63 = vld [vmem:[#allocation7 + $0x40] sm:$0xff]  ;;  %v342_v2 = vld [vmem:[#allocation7 + $0x48] sm:$0xff] }
  0x9f   :  { %1375 = vmatprep.subr.bf16.mxu1 %v1793_v0  ;;  %v1400_v62 = vpack.c.bf16 %v340_v61, %v339_v60  ;;  %v1403_v3 = vpack.c.bf16 %v342_v2, %v341_v63  ;;  %v343_v4 = vld [vmem:[#allocation7 + $0x50] sm:$0xff]  ;;  %v344_v5 = vld [vmem:[#allocation7 + $0x58] sm:$0xff]  ;;  %v345_v7 = vld [vmem:[#allocation7 + $0x60] sm:$0xff] }
  0xa0   :  { %1353 = vmatpush3.bf16.msra.mxu0 %v1352_v21  ;;  %v1406_v6 = vpack.c.bf16 %v344_v5, %v343_v4  ;;  %v346_v8 = vld [vmem:[#allocation7 + $0x68] sm:$0xff]  ;;  %v918_v10 = vld [vmem:[%s2146_s9] ss:$0 sm:$0xff]  ;;  %v347_v15 = vld [vmem:[#allocation7 + $0x70] sm:$0xff] }
  0xa1   :  { %1354 = vmatprep.subr.bf16.mxu0 %v1793_v0  ;;  %v1409_v9 = vpack.c.bf16 %v346_v8, %v345_v7  ;;  %v348_v16 = vld [vmem:[#allocation7 + $0x78] sm:$0xff]  ;;  %v425_v18 = vld [vmem:[#allocation8] sm:$0xff]  ;;  %v426_v19 = vld [vmem:[#allocation8 + $0x8] sm:$0xff] }
  0xa2   :  { %1377 = vmatpush3.bf16.msra.mxu1 %v1376_v30  ;;  %v1412_v17 = vpack.c.bf16 %v348_v16, %v347_v15  ;;  %v427_v20 = vld [vmem:[#allocation8 + $0x10] sm:$0xff]  ;;  %v1415_v21 = vpack.c.bf16 %v426_v19, %v425_v18  ;;  %v428_v22 = vld [vmem:[#allocation8 + $0x18] sm:$0xff]  ;;  %v429_v24 = vld [vmem:[#allocation8 + $0x20] sm:$0xff] }
  0xa3   :  { %1378 = vmatprep.subr.bf16.mxu1 %v1793_v0  ;;  %v1418_v23 = vpack.c.bf16 %v428_v22, %v427_v20  ;;  %v430_v25 = vld [vmem:[#allocation8 + $0x28] sm:$0xff]  ;;  %v432_v28 = vld [vmem:[#allocation8 + $0x38] sm:$0xff]  ;;  %v433_v30 = vld [vmem:[#allocation8 + $0x40] sm:$0xff] }
  0xa4   :  { %1356 = vmatpush3.bf16.msra.mxu0 %v1355_v27  ;;  %v1421_v26 = vpack.c.bf16 %v430_v25, %v429_v24  ;;  %v431_v27 = vld [vmem:[#allocation8 + $0x30] sm:$0xff]  ;;  %v434_v31 = vld [vmem:[#allocation8 + $0x48] sm:$0xff]  ;;  %v436_v34 = vld [vmem:[#allocation8 + $0x58] sm:$0xff] }
  0xa5   :  { %1357 = vmatprep.subr.bf16.mxu0 %v1793_v0  ;;  %v1424_v29 = vpack.c.bf16 %v432_v28, %v431_v27  ;;  %v1427_v32 = vpack.c.bf16 %v434_v31, %v433_v30  ;;  %v438_v37 = vld [vmem:[#allocation8 + $0x68] sm:$0xff]  ;;  %v439_v44 = vld [vmem:[#allocation8 + $0x70] sm:$0xff]  ;;  %v520_v51 = vld [vmem:[#allocation10 + $0x18] sm:$0xff] }
  0xa6   :  { %1380 = vmatpush3.bf16.msra.mxu1 %v1379_v36  ;;  %v437_v36 = vld [vmem:[#allocation8 + $0x60] sm:$0xff]  ;;  %v518_v48 = vld [vmem:[#allocation10 + $0x8] sm:$0xff]  ;;  %v519_v49 = vld [vmem:[#allocation10 + $0x10] sm:$0xff] }
  0xa7   :  { %1381 = vmatprep.subr.bf16.mxu1 %v1793_v0  ;;  %v1433_v38 = vpack.c.bf16 %v438_v37, %v437_v36  ;;  %v1442_v52 = vpack.c.bf16 %v520_v51, %v519_v49  ;;  %v521_v53 = vld [vmem:[#allocation10 + $0x20] sm:$0xff]  ;;  %v524_v57 = vld [vmem:[#allocation10 + $0x38] sm:$0xff]  ;;  %v526_v60 = vld [vmem:[#allocation10 + $0x48] sm:$0xff] }
  0xa8   :  { %1359 = vmatpush3.bf16.msra.mxu0 %v1358_v33  ;;  %v435_v33 = vld [vmem:[#allocation8 + $0x50] sm:$0xff]  ;;  %v528_v63 = vld [vmem:[#allocation10 + $0x58] sm:$0xff]  ;;  %v530_v4 = vld [vmem:[#allocation10 + $0x68] sm:$0xff] }
  0xa9   :  { %1360 = vmatprep.subr.bf16.mxu0 %v1793_v0  ;;  %v1430_v35 = vpack.c.bf16 %v436_v34, %v435_v33  ;;  %v610_v15 = vld [vmem:[#allocation11 + $0x8] sm:$0xff]  ;;  %v611_v16 = vld [vmem:[#allocation11 + $0x10] sm:$0xff]  ;;  %v612_v18 = vld [vmem:[#allocation11 + $0x18] sm:$0xff] }
  0xaa   :  { %1383 = vmatpush3.bf16.msra.mxu1 %v1382_v42  ;;  %v1466_v19 = vpack.c.bf16 %v612_v18, %v611_v16  ;;  %v613_v20 = vld [vmem:[#allocation11 + $0x20] sm:$0xff]  ;;  %v616_v24 = vld [vmem:[#allocation11 + $0x38] sm:$0xff]  ;;  %v618_v27 = vld [vmem:[#allocation11 + $0x48] sm:$0xff] }
  0xab   :  { %1384 = vmatprep.subr.bf16.mxu1 %v1793_v0  ;;  %v620_v30 = vld [vmem:[#allocation11 + $0x58] sm:$0xff]  ;;  %v622_v33 = vld [vmem:[#allocation11 + $0x68] sm:$0xff]  ;;  %v707_v51 = vld [vmem:[#allocation13 + $0x30] sm:$0xff] }
  0xac   :  { %1362 = vmatpush3.bf16.msra.mxu0 %v1361_v39  ;;  %v919_v39 = vld [vmem:[%s2146_s9 + $0x1] ss:$0 sm:$0xff]  ;;  %v706_v49 = vld [vmem:[#allocation13 + $0x28] sm:$0xff]  ;;  %v800_v18 = vld [vmem:[#allocation14 + $0x38] sm:$0xff] }
  0xad   :  { %1363 = vmatprep.subr.bf16.mxu0 %v1793_v0  ;;  %v798_v16 = vld [vmem:[#allocation14 + $0x28] sm:$0xff] }
  0xae   :  { %1386 = vmatpush3.bf16.msra.mxu1 %v1385_v46 }
  0xaf   :  { %1387 = vmatprep.subr.bf16.mxu1 %v1793_v0 }
  0xb0   :  { %1365 = vmatpush3.bf16.msra.mxu0 %v1364_v45  ;;  %v440_v45 = vld [vmem:[#allocation8 + $0x78] sm:$0xff] }
  0xb1   :  { %1390 = vmatprep.subr.bf16.mxu0 %v1793_v0  ;;  %v1436_v46 = vpack.c.bf16 %v440_v45, %v439_v44  ;;  %v703_v44 = vld [vmem:[#allocation13 + $0x10] sm:$0xff] }
  0xb2   :  { %1389 = vmatpush3.bf16.msra.mxu1 %v1388_v50 }
  0xb3   :  { %1095 = vmatmul.mubr.f32.vlgmr.msra.gmra.mrb[0].mxu0 %v148_v47  ;;  %1414 = vmatprep.subr.bf16.mxu1 %v1793_v0  ;;  %v517_v47 = vld [vmem:[#allocation10] sm:$0xff] }
  0xb4   :  { %1164 = vmatprep.mubr.msk.f32.mxu0 %vm1794_vm0, %v1795_v1  ;;  %1392 = vmatpush3.bf16.msra.mxu0 %v1391_v54  ;;  %v1439_v50 = vpack.c.bf16 %v518_v48, %v517_v47  ;;  %v522_v54 = vld [vmem:[#allocation10 + $0x28] sm:$0xff]  ;;  %v705_v48 = vld [vmem:[#allocation13 + $0x20] sm:$0xff] }
  0xb5   :  { %1393 = vmatprep.subr.bf16.mxu0 %v1793_v0  ;;  %v1445_v55 = vpack.c.bf16 %v522_v54, %v521_v53  ;;  %v709_v54 = vld [vmem:[#allocation13 + $0x40] sm:$0xff] }
  0xb8   :  { %1395 = vmatpush3.bf16.msra.mxu0 %v1394_v56  ;;  %v523_v56 = vld [vmem:[#allocation10 + $0x30] sm:$0xff] }
  0xb9   :  { %1396 = vmatprep.subr.bf16.mxu0 %v1793_v0  ;;  %v1448_v58 = vpack.c.bf16 %v524_v57, %v523_v56  ;;  %v711_v57 = vld [vmem:[#allocation13 + $0x50] sm:$0xff] }
  0xbc   :  { %1398 = vmatpush3.bf16.msra.mxu0 %v1397_v59  ;;  %v525_v59 = vld [vmem:[#allocation10 + $0x40] sm:$0xff] }
  0xbd   :  { %1399 = vmatprep.subr.bf16.mxu0 %v1793_v0  ;;  %v1451_v61 = vpack.c.bf16 %v526_v60, %v525_v59  ;;  %v713_v60 = vld [vmem:[#allocation13 + $0x60] sm:$0xff] }
  0xc0   :  { %1401 = vmatpush3.bf16.msra.mxu0 %v1400_v62  ;;  %v527_v62 = vld [vmem:[#allocation10 + $0x50] sm:$0xff] }
  0xc1   :  { %1402 = vmatprep.subr.bf16.mxu0 %v1793_v0  ;;  %v1454_v2 = vpack.c.bf16 %v528_v63, %v527_v62  ;;  %v922_v63 = vld [vmem:[%s2146_s9 + $0x4] ss:$0 sm:$0xff] }
  0xc4   :  { %1404 = vmatpush3.bf16.msra.mxu0 %v1403_v3  ;;  %v529_v3 = vld [vmem:[#allocation10 + $0x60] sm:$0xff] }
  0xc5   :  { %1405 = vmatprep.subr.bf16.mxu0 %v1793_v0  ;;  %v1457_v5 = vpack.c.bf16 %v530_v4, %v529_v3 }
  0xc8   :  { %1407 = vmatpush3.bf16.msra.mxu0 %v1406_v6  ;;  %v920_v6 = vld [vmem:[%s2146_s9 + $0x2] ss:$0 sm:$0xff] }
  0xc9   :  { %1408 = vmatprep.subr.bf16.mxu0 %v1793_v0 }
  0xcc   :  { %1410 = vmatpush3.bf16.msra.mxu0 %v1409_v9 }
  0xcd   :  { %1411 = vmatprep.subr.bf16.mxu0 %v1793_v0 }
  0xd0   :  { %1413 = vmatpush3.bf16.msra.mxu0 %v1412_v17 }
  0xd1   :  { %1438 = vmatprep.subr.bf16.mxu0 %v1793_v0 }
 0x186   :  { %v236_v11 = vpop.f32.mrb[0].mxu0 }
 0x187   :  { %v237_v12 = vadd.f32 %v918_v10, %v236_v11  ;;  %v1096_v13 = vpop.f32.mrb[1].mxu0  ;;  %v531_v11 = vld [vmem:[#allocation10 + $0x70] sm:$0xff] }
 0x189   :  { %v240_v14 = vmax.f32 %v237_v12, 0.0  ;;  %v532_v12 = vld [vmem:[#allocation10 + $0x78] sm:$0xff] }
 0x18a   :  { %v1460_v13 = vpack.c.bf16 %v532_v12, %v531_v11  ;;  %v795_v11 = vld [vmem:[#allocation14 + $0x10] sm:$0xff] }
 0x18b   :  { %1130 = vmatmul.mubr.f32.vlgmr.msra.gmra.mrb[0].mxu1 %v240_v14  ;;  %v609_v14 = vld [vmem:[#allocation11] sm:$0xff] }
 0x18c   :  { %1199 = vmatprep.mubr.msk.f32.mxu1 %vm1794_vm0, %v1795_v1  ;;  %1416 = vmatpush3.bf16.msra.mxu1 %v1415_v21  ;;  %v1463_v17 = vpack.c.bf16 %v610_v15, %v609_v14  ;;  %v614_v21 = vld [vmem:[#allocation11 + $0x28] sm:$0xff]  ;;  %v797_v15 = vld [vmem:[#allocation14 + $0x20] sm:$0xff] }
 0x18d   :  { %1417 = vmatprep.subr.bf16.mxu1 %v1793_v0  ;;  %v1469_v22 = vpack.c.bf16 %v614_v21, %v613_v20  ;;  %v801_v20 = vld [vmem:[#allocation14 + $0x40] sm:$0xff]  ;;  %v802_v21 = vld [vmem:[#allocation14 + $0x48] sm:$0xff] }
 0x190   :  { %1419 = vmatpush3.bf16.msra.mxu1 %v1418_v23  ;;  %v615_v23 = vld [vmem:[#allocation11 + $0x30] sm:$0xff] }
 0x191   :  { %1420 = vmatprep.subr.bf16.mxu1 %v1793_v0  ;;  %v1472_v25 = vpack.c.bf16 %v616_v24, %v615_v23  ;;  %v803_v23 = vld [vmem:[#allocation14 + $0x50] sm:$0xff]  ;;  %v804_v24 = vld [vmem:[#allocation14 + $0x58] sm:$0xff] }
 0x194   :  { %1422 = vmatpush3.bf16.msra.mxu1 %v1421_v26  ;;  %v617_v26 = vld [vmem:[#allocation11 + $0x40] sm:$0xff] }
 0x195   :  { %1423 = vmatprep.subr.bf16.mxu1 %v1793_v0  ;;  %v1475_v28 = vpack.c.bf16 %v618_v27, %v617_v26  ;;  %v805_v26 = vld [vmem:[#allocation14 + $0x60] sm:$0xff]  ;;  %v806_v27 = vld [vmem:[#allocation14 + $0x68] sm:$0xff] }
 0x198   :  { %1425 = vmatpush3.bf16.msra.mxu1 %v1424_v29  ;;  %v619_v29 = vld [vmem:[#allocation11 + $0x50] sm:$0xff] }
 0x199   :  { %1426 = vmatprep.subr.bf16.mxu1 %v1793_v0  ;;  %v1478_v31 = vpack.c.bf16 %v620_v30, %v619_v29  ;;  %v923_v29 = vld [vmem:[%s2146_s9 + $0x5] ss:$0 sm:$0xff] }
 0x19c   :  { %1428 = vmatpush3.bf16.msra.mxu1 %v1427_v32  ;;  %v621_v32 = vld [vmem:[#allocation11 + $0x60] sm:$0xff] }
 0x19d   :  { %1429 = vmatprep.subr.bf16.mxu1 %v1793_v0  ;;  %v1481_v34 = vpack.c.bf16 %v622_v33, %v621_v32 }
 0x1a0   :  { %1431 = vmatpush3.bf16.msra.mxu1 %v1430_v35  ;;  %v921_v35 = vld [vmem:[%s2146_s9 + $0x3] ss:$0 sm:$0xff] }
 0x1a1   :  { %1432 = vmatprep.subr.bf16.mxu1 %v1793_v0 }
 0x1a4   :  { %1434 = vmatpush3.bf16.msra.mxu1 %v1433_v38 }
 0x1a5   :  { %1435 = vmatprep.subr.bf16.mxu1 %v1793_v0 }
 0x1a8   :  { %1437 = vmatpush3.bf16.msra.mxu1 %v1436_v46  ;;  %v704_v46 = vld [vmem:[#allocation13 + $0x18] sm:$0xff] }
 0x1a9   :  { %1462 = vmatprep.subr.bf16.mxu1 %v1793_v0  ;;  %v1490_v47 = vpack.c.bf16 %v704_v46, %v703_v44 }
 0x25e   :  { %v328_v40 = vpop.f32.mrb[0].mxu1 }
 0x25f   :  { %v329_v41 = vadd.f32 %v919_v39, %v328_v40  ;;  %v1131_v42 = vpop.f32.mrb[1].mxu1  ;;  %v623_v39 = vld [vmem:[#allocation11 + $0x70] sm:$0xff]  ;;  %v624_v40 = vld [vmem:[#allocation11 + $0x78] sm:$0xff] }
 0x260   :  { %v701_v42 = vld [vmem:[#allocation13] sm:$0xff] }
 0x261   :  { %v332_v43 = vmax.f32 %v329_v41, 0.0  ;;  %v1484_v41 = vpack.c.bf16 %v624_v40, %v623_v39 }
 0x263   :  { %1165 = vmatmul.mubr.f32.vlgmr.msra.gmra.mrb[2].mxu0 %v332_v43  ;;  %v702_v43 = vld [vmem:[#allocation13 + $0x8] sm:$0xff] }
 0x264   :  { %1234 = vmatprep.mubr.msk.f32.mxu0 %vm1794_vm0, %v1795_v1  ;;  %1440 = vmatpush3.bf16.msra.mxu0 %v1439_v50  ;;  %v1487_v45 = vpack.c.bf16 %v702_v43, %v701_v42  ;;  %v1493_v50 = vpack.c.bf16 %v706_v49, %v705_v48 }
 0x265   :  { %1441 = vmatprep.subr.bf16.mxu0 %v1793_v0 }
 0x268   :  { %1443 = vmatpush3.bf16.msra.mxu0 %v1442_v52  ;;  %v708_v52 = vld [vmem:[#allocation13 + $0x38] sm:$0xff] }
 0x269   :  { %1444 = vmatprep.subr.bf16.mxu0 %v1793_v0  ;;  %v1496_v53 = vpack.c.bf16 %v708_v52, %v707_v51 }
 0x26c   :  { %1446 = vmatpush3.bf16.msra.mxu0 %v1445_v55  ;;  %v710_v55 = vld [vmem:[#allocation13 + $0x48] sm:$0xff] }
 0x26d   :  { %1447 = vmatprep.subr.bf16.mxu0 %v1793_v0  ;;  %v1499_v56 = vpack.c.bf16 %v710_v55, %v709_v54 }
 0x270   :  { %1449 = vmatpush3.bf16.msra.mxu0 %v1448_v58  ;;  %v712_v58 = vld [vmem:[#allocation13 + $0x58] sm:$0xff] }
 0x271   :  { %1450 = vmatprep.subr.bf16.mxu0 %v1793_v0  ;;  %v1502_v59 = vpack.c.bf16 %v712_v58, %v711_v57 }
 0x274   :  { %1452 = vmatpush3.bf16.msra.mxu0 %v1451_v61  ;;  %v714_v61 = vld [vmem:[#allocation13 + $0x68] sm:$0xff] }
 0x275   :  { %1453 = vmatprep.subr.bf16.mxu0 %v1793_v0  ;;  %v1505_v62 = vpack.c.bf16 %v714_v61, %v713_v60 }
 0x278   :  { %1455 = vmatpush3.bf16.msra.mxu0 %v1454_v2 }
 0x279   :  { %1456 = vmatprep.subr.bf16.mxu0 %v1793_v0 }
 0x27c   :  { %1458 = vmatpush3.bf16.msra.mxu0 %v1457_v5 }
 0x27d   :  { %1459 = vmatprep.subr.bf16.mxu0 %v1793_v0 }
 0x280   :  { %1461 = vmatpush3.bf16.msra.mxu0 %v1460_v13  ;;  %v796_v13 = vld [vmem:[#allocation14 + $0x18] sm:$0xff] }
 0x281   :  { %1486 = vmatprep.subr.bf16.mxu0 %v1793_v0  ;;  %v1514_v14 = vpack.c.bf16 %v796_v13, %v795_v11 }
 0x336   :  { %v420_v7 = vpop.f32.mrb[2].mxu0 }
 0x337   :  { %v421_v8 = vadd.f32 %v920_v6, %v420_v7  ;;  %v1166_v9 = vpop.f32.mrb[3].mxu0  ;;  %v715_v6 = vld [vmem:[#allocation13 + $0x70] sm:$0xff]  ;;  %v716_v7 = vld [vmem:[#allocation13 + $0x78] sm:$0xff] }
 0x338   :  { %v793_v9 = vld [vmem:[#allocation14] sm:$0xff] }
 0x339   :  { %v424_v10 = vmax.f32 %v421_v8, 0.0  ;;  %v1508_v8 = vpack.c.bf16 %v716_v7, %v715_v6 }
 0x33b   :  { %1200 = vmatmul.mubr.f32.vlgmr.msra.gmra.mrb[2].mxu1 %v424_v10  ;;  %v794_v10 = vld [vmem:[#allocation14 + $0x8] sm:$0xff] }
 0x33c   :  { %1269 = vmatprep.mubr.msk.f32.mxu1 %vm1794_vm0, %v1795_v1  ;;  %1464 = vmatpush3.bf16.msra.mxu1 %v1463_v17  ;;  %v1511_v12 = vpack.c.bf16 %v794_v10, %v793_v9  ;;  %v1517_v17 = vpack.c.bf16 %v798_v16, %v797_v15 }
 0x33d   :  { %1465 = vmatprep.subr.bf16.mxu1 %v1793_v0 }
 0x340   :  { %1467 = vmatpush3.bf16.msra.mxu1 %v1466_v19 }
 0x341   :  { %1468 = vmatprep.subr.bf16.mxu1 %v1793_v0 }
 0x344   :  { %1470 = vmatpush3.bf16.msra.mxu1 %v1469_v22  ;;  %v1523_v22 = vpack.c.bf16 %v802_v21, %v801_v20 }
 0x345   :  { %1471 = vmatprep.subr.bf16.mxu1 %v1793_v0 }
 0x348   :  { %1473 = vmatpush3.bf16.msra.mxu1 %v1472_v25  ;;  %v1526_v25 = vpack.c.bf16 %v804_v24, %v803_v23 }
 0x349   :  { %1474 = vmatprep.subr.bf16.mxu1 %v1793_v0 }
 0x34c   :  { %1476 = vmatpush3.bf16.msra.mxu1 %v1475_v28  ;;  %v1529_v28 = vpack.c.bf16 %v806_v27, %v805_v26 }
 0x34d   :  { %1477 = vmatprep.subr.bf16.mxu1 %v1793_v0 }
 0x350   :  { %1479 = vmatpush3.bf16.msra.mxu1 %v1478_v31 }
 0x351   :  { %1480 = vmatprep.subr.bf16.mxu1 %v1793_v0 }
 0x354   :  { %1482 = vmatpush3.bf16.msra.mxu1 %v1481_v34  ;;  %v807_v34 = vld [vmem:[#allocation14 + $0x70] sm:$0xff] }
 0x355   :  { %1483 = vmatprep.subr.bf16.mxu1 %v1793_v0 }
 0x358   :  { %1485 = vmatpush3.bf16.msra.mxu1 %v1484_v41 }
 0x359   :  { %1510 = vmatprep.subr.bf16.mxu1 %v1793_v0 }
 0x40e   :  { %v512_v36 = vpop.f32.mrb[2].mxu1 }
 0x40f   :  { %v513_v37 = vadd.f32 %v921_v35, %v512_v36  ;;  %v1201_v38 = vpop.f32.mrb[3].mxu1  ;;  %v808_v35 = vld [vmem:[#allocation14 + $0x78] sm:$0xff] }
 0x410   :  { %v1532_v36 = vpack.c.bf16 %v808_v35, %v807_v34 }
 0x411   :  { %516 = vst [vmem:[#allocation17] sm:$0xff] %v513_v37  ;;  %1235 = vmatmul.mubr.f32.vlgmr.msra.gmra.mrb[4].mxu0 %v513_v37  ;;  %v924_v37 = vld [vmem:[%s2146_s9 + $0x6] ss:$0 sm:$0xff] }
 0x412   :  { %1304 = vmatprep.mubr.msk.f32.mxu0 %vm1794_vm0, %v1795_v1  ;;  %1488 = vmatpush3.bf16.msra.mxu0 %v1487_v45 }
 0x413   :  { %1489 = vmatprep.subr.bf16.mxu0 %v1793_v0 }
 0x416   :  { %1491 = vmatpush3.bf16.msra.mxu0 %v1490_v47 }
 0x417   :  { %1492 = vmatprep.subr.bf16.mxu0 %v1793_v0 }
 0x41a   :  { %1494 = vmatpush3.bf16.msra.mxu0 %v1493_v50 }
 0x41b   :  { %1495 = vmatprep.subr.bf16.mxu0 %v1793_v0 }
 0x41e   :  { %1497 = vmatpush3.bf16.msra.mxu0 %v1496_v53 }
 0x41f   :  { %1498 = vmatprep.subr.bf16.mxu0 %v1793_v0 }
 0x422   :  { %1500 = vmatpush3.bf16.msra.mxu0 %v1499_v56 }
 0x423   :  { %1501 = vmatprep.subr.bf16.mxu0 %v1793_v0 }
 0x426   :  { %1503 = vmatpush3.bf16.msra.mxu0 %v1502_v59 }
 0x427   :  { %1504 = vmatprep.subr.bf16.mxu0 %v1793_v0 }
 0x42a   :  { %1506 = vmatpush3.bf16.msra.mxu0 %v1505_v62 }
 0x42b   :  { %1507 = vmatprep.subr.bf16.mxu0 %v1793_v0 }
 0x42e   :  { %1509 = vmatpush3.bf16.msra.mxu0 %v1508_v8 }
 0x4e4   :  { %v604_v2 = vpop.f32.mrb[4].mxu0 }
 0x4e5   :  { %v605_v3 = vadd.f32 %v922_v63, %v604_v2  ;;  %v1236_v4 = vpop.f32.mrb[5].mxu0 }
 0x4e7   :  { %v608_v5 = vmax.f32 %v605_v3, 0.0 }
 0x4e9   :  { %1270 = vmatmul.mubr.f32.vlgmr.msra.gmra.mrb[4].mxu1 %v608_v5 }
 0x4ea   :  { %1339 = vmatprep.mubr.msk.f32.mxu1 %vm1794_vm0, %v1795_v1  ;;  %1512 = vmatpush3.bf16.msra.mxu1 %v1511_v12  ;;  %v799_v1 = vld [vmem:[#allocation14 + $0x30] sm:$0xff] }
 0x4eb   :  { %1513 = vmatprep.subr.bf16.mxu1 %v1793_v0  ;;  %v1520_v19 = vpack.c.bf16 %v800_v18, %v799_v1 }
 0x4ee   :  { %1515 = vmatpush3.bf16.msra.mxu1 %v1514_v14 }
 0x4ef   :  { %1516 = vmatprep.subr.bf16.mxu1 %v1793_v0 }
 0x4f2   :  { %1518 = vmatpush3.bf16.msra.mxu1 %v1517_v17 }
 0x4f3   :  { %1519 = vmatprep.subr.bf16.mxu1 %v1793_v0 }
 0x4f6   :  { %1521 = vmatpush3.bf16.msra.mxu1 %v1520_v19 }
 0x4f7   :  { %1522 = vmatprep.subr.bf16.mxu1 %v1793_v0 }
 0x4fa   :  { %1524 = vmatpush3.bf16.msra.mxu1 %v1523_v22 }
 0x4fb   :  { %1525 = vmatprep.subr.bf16.mxu1 %v1793_v0 }
 0x4fe   :  { %1527 = vmatpush3.bf16.msra.mxu1 %v1526_v25 }
 0x4ff   :  { %1528 = vmatprep.subr.bf16.mxu1 %v1793_v0 }
 0x502   :  { %1530 = vmatpush3.bf16.msra.mxu1 %v1529_v28 }
 0x503   :  { %1531 = vmatprep.subr.bf16.mxu1 %v1793_v0 }
 0x506   :  { %1533 = vmatpush3.bf16.msra.mxu1 %v1532_v36 }
 0x5bc   :  { %v696_v30 = vpop.f32.mrb[4].mxu1 }
 0x5bd   :  { %v697_v31 = vadd.f32 %v923_v29, %v696_v30  ;;  %v1271_v32 = vpop.f32.mrb[5].mxu1 }
 0x5bf   :  { %v700_v33 = vmax.f32 %v697_v31, 0.0 }
 0x5c1   :  { %1305 = vmatmul.mubr.f32.vlgmr.msra.gmra.mrb[6].mxu0 %v700_v33 }
 0x694   :  { %v788_v38 = vpop.f32.mrb[6].mxu0 }
 0x695   :  { %v789_v39 = vadd.f32 %v924_v37, %v788_v38  ;;  %v1306_v0 = vpop.f32.mrb[7].mxu0 }
 0x697   :  { %v792_v40 = vmax.f32 %v789_v39, 0.0 }
 0x699   :  { %1340 = vmatmul.mubr.f32.vlgmr.msra.gmra.mrb[6].mxu1 %v792_v40 }
 0x69a   :  { %1736 = shalt.err (!%p1733_p12)
}
 0x69b   :  { %s1737_s28 = scalar_lea.hbm %s2148_s11, 128 }
 0x69c   :  { %p1738_p13 = scmp.ne.s32.totalorder %s2148_s11, %s1737_s28  ;;  %p1741_p0 = scmp.lt.u32.totalorder %s1737_s28, %s2148_s11 }
 0x69e   :  { %p1743_p1 = pnand %p1741_p0, %p1738_p13 }
 0x6a0   :  { %1746 = shalt.err (!%p1743_p1)
}
 0x6a1   :  { %904 = dma.vmem_to_hbm [thread:$0]  %s902_s2, 128, %s2148_s11, [#allocation18]   ;;  %v925_v41 = vld [vmem:[%s2146_s9 + $0x7] ss:$0 sm:$0xff] }
 0x6a2   :  { %s1797_s0 = smov [#allocation16]  }
 0x6a3   :  { %s891_s30 = sshll.u32 %s1797_s0, 4  ;;  %s892_s30 = int_to_ptr.vmem [resolvable:$true] %s891_s30 }
 0x6a4   :  { %s1747_s14 = scalar_lea.vmem %s892_s30, 128  ;;  %p1752_p3 = scmp.lt.s32.totalorder %s892_s30, %s892_s30 }
 0x6a5   :  { %p1748_p2 = scmp.ne.s32.totalorder %s892_s30, %s1747_s14  ;;  %p1753_p4 = scmp.lt.s32.totalorder %s1747_s14, %s1747_s14 }
 0x6a7   :  { %p1754_p5 = por %p1753_p4, %p1752_p3 }
 0x6a9   :  { %p1755_p6 = pnand %p1754_p5, %p1748_p2 }
 0x76c   :  { %v880_v42 = vpop.f32.mrb[6].mxu1 }
 0x76d   :  { %v881_v43 = vadd.f32 %v925_v41, %v880_v42  ;;  %v1341_v44 = vpop.f32.mrb[7].mxu1 }
 0x76f   :  { %884 = vst [vmem:[#allocation16] sm:$0xff] %v881_v43 }
 0x770   :  { %1758 = shalt.err (!%p1755_p6)
}
 0x771   :  { %s1759_s17 = scalar_lea.hbm %s2147_s10, 128 }
 0x772   :  { %p1760_p7 = scmp.ne.s32.totalorder %s2147_s10, %s1759_s17  ;;  %p1763_p8 = scmp.lt.u32.totalorder %s1759_s17, %s2147_s10 }
 0x774   :  { %p1765_p9 = pnand %p1763_p8, %p1760_p7 }
 0x776   :  { %1768 = shalt.err (!%p1765_p9)
}
 0x777   :  { %894 = dma.vmem_to_hbm [thread:$0]  %s892_s30, 128, %s2147_s10, [#allocation4]  }
 0x778   :  { %1779 = dma.done.wait [#allocation4], 128  }
 0x779   :  { %1780 = vsyncadd [#allocation4], 4294967168 }
 0x77a   :  { %1781 = dma.done.wait [#allocation18], 128  }
 0x77b   :  { %1782 = vsyncadd [#allocation18], 4294967168 }
 0x77c   :  { %911 = vsyncpa [#allocation3], 1 }
 0x77d   :  { %912 = vsyncpa [#allocation6], 1 }
 0x77e   :  { %913 = vsyncpa [#allocation9], 1 }
 0x77f   :  { %914 = vsyncpa [#allocation12], 1 }
 0x780   :  { %915 = vsyncpa [#allocation15], 1 }
 0x781   :  { %916 = vsyncpa [#allocation4], 1 }
 0x782   :  { %917 = vsyncpa [#allocation18], 1 }

</bundles_post_ra>
